<compile_context>
chip_gen: v7x
topology: tpu7x:2x2x1
jax: 0.10.0
libtpu: 0.0.40
codegen_flags: <defaults>
</compile_context>

<pallas_src>
import functools

import jax
import jax.numpy as jnp
from jax.experimental import pallas as pl
from jax.experimental.pallas import tpu as pltpu


# --------------------------------------------------------------------------
# Config / hardware-aware VMEM budget
# --------------------------------------------------------------------------

def _default_vmem_limit():
    try:
        cap = pltpu.get_tpu_info().vmem_capacity_bytes
    except Exception:
        cap = 64 * 1024 * 1024  # conservative (v7x per-core)
    return int(min(cap * 3 // 4, 96 * 1024 * 1024))


VMEM_LIMIT = _default_vmem_limit()


def _pick_tm_spatial(hws):   # spatial (M) tile for 1x1 convs, cdiv grid
    if hws >= 512:
        return 512
    if hws >= 256:
        return 256
    return hws               # full (exact) for small feature maps


def _pick_tk(K):             # K tile: multiple of 128 that divides K, else full
    for t in (512, 384, 256, 128):
        if K % t == 0:
            return t
    return K                 # K must stay exactly covered (accumulator!)


def _pick_tc(C):             # channel (lane) tile for the depthwise kernel
    for t in (512, 384, 256, 128):
        if C % t == 0:
            return t
    return C


def _pick_ts(S):             # spatial tile for the pooling kernel (exact)
    for t in (2048, 1024, 512, 256, 128, 64, 32, 16, 8):
        if S % t == 0:
            return t
    return S


# --------------------------------------------------------------------------
# In-kernel math helpers (only called inside Pallas kernels)
# --------------------------------------------------------------------------

def _sigmoid(x):
    # Overflow-free: sigmoid(x) = r if x>=0 else e*r, with e = exp(-|x|),
    # r = 1/(1+e).  Reciprocal goes to the EUP slot (free on the VPU path).
    e = jnp.exp(-jnp.abs(x))
    r = pl.reciprocal(1.0 + e, approx=True)
    return jnp.where(x >= 0, r, e * r)


def _silu(x):
    return x * _sigmoid(x)


# --------------------------------------------------------------------------
# Pallas kernels
# --------------------------------------------------------------------------

def _mm_kernel(a_ref, b_ref, s_ref, bi_ref, o_ref, *, act):
    """out = act((A @ B) * scale + bias); grid=(M tiles, K tiles), K innermost."""
    k = pl.program_id(1)

    @pl.when(k == 0)
    def _():
        o_ref[...] = jnp.zeros_like(o_ref)

    o_ref[...] += jnp.dot(a_ref[...].astype(jnp.bfloat16), b_ref[...],
                          preferred_element_type=jnp.float32)

    @pl.when(k == pl.num_programs(1) - 1)
    def _():
        y = o_ref[...] * s_ref[...] + bi_ref[...]
        if act == "silu":
            y = _silu(y)
        elif act == "sigmoid":
            y = _sigmoid(y)
        o_ref[...] = y


def _c1_kernel(*refs, act, has_gate, has_res):
    """Batched 1x1 conv (full Cin per block): grid=(batch, spatial tiles).

    Optionally fuses a per-(batch, in-channel) SE gate into the A operand and a
    residual add after the BN epilogue.  Output is stored bf16.
    """
    refs = list(refs)
    a_ref = refs.pop(0)
    g_ref = refs.pop(0) if has_gate else None
    b_ref = refs.pop(0)
    s_ref = refs.pop(0)
    bi_ref = refs.pop(0)
    r_ref = refs.pop(0) if has_res else None
    o_ref = refs.pop(0)

    a = a_ref[0]
    if has_gate:
        a = a.astype(jnp.float32) * g_ref[0]          # (tm, Cin) * (1, Cin)
    y = jnp.dot(a.astype(jnp.bfloat16), b_ref[...],
                preferred_element_type=jnp.float32)
    y = y * s_ref[...] + bi_ref[...]
    if act == "silu":
        y = _silu(y)
    elif act == "sigmoid":
        y = _sigmoid(y)
    if has_res:
        y = y + r_ref[0].astype(jnp.float32)
    o_ref[0] = y.astype(o_ref.dtype)


def _dw_kernel(x_ref, w_ref, s_ref, b_ref, *rest, k, H, W, pad, inv_hw, with_pool):
    """Depthwise conv (stride 1) + folded BN + SiLU, padding done in VMEM.

    The unpadded bf16 input block is copied into a zero-padded f32 VMEM
    scratch; the k*k shifted windows are read from the scratch (no jnp.pad HBM
    pass).  For stride-1 blocks the per-channel spatial mean (SE squeeze) is
    emitted as a second output.
    """
    if with_pool:
        o_ref, p_ref, scr = rest
    else:
        o_ref, scr = rest

    scr[...] = jnp.zeros_like(scr)
    scr[pad:pad + H, pad:pad + W, :] = x_ref[0].astype(jnp.float32)

    acc = scr[0:H, 0:W, :] * w_ref[0]
    for t in range(1, k * k):
        i, j = divmod(t, k)
        acc = acc + scr[i:i + H, j:j + W, :] * w_ref[t]
    y = _silu(acc * s_ref[0] + b_ref[0])
    o_ref[0] = y.astype(o_ref.dtype)
    if with_pool:
        p_ref[0] = jnp.sum(jnp.sum(y, axis=1), axis=0, keepdims=True) * inv_hw


def _pool_kernel(x_ref, o_ref, *, inv_hw):
    """Global average pool (f32 accumulation), accumulated across spatial tiles."""
    s = pl.program_id(1)

    @pl.when(s == 0)
    def _():
        o_ref[...] = jnp.zeros_like(o_ref)

    o_ref[0] += jnp.sum(x_ref[0].astype(jnp.float32), axis=0, keepdims=True) * inv_hw


def _se_kernel(p_ref, w1_ref, b1_ref, w2_ref, b2_ref, o_ref):
    """Fused SE gate: sigmoid(fc2(silu(fc1(pooled))))."""
    h = jnp.dot(p_ref[...].astype(jnp.bfloat16), w1_ref[...],
                preferred_element_type=jnp.float32) + b1_ref[...]
    h = _silu(h)
    g = jnp.dot(h.astype(jnp.bfloat16), w2_ref[...],
                preferred_element_type=jnp.float32) + b2_ref[...]
    o_ref[...] = _sigmoid(g)


def _head_pool_kernel(a_ref, b_ref, s_ref, bi_ref, o_ref, *, inv_hw):
    """Fused head 1x1 conv + BN + SiLU + global average pool (per image)."""
    y = jnp.dot(a_ref[0].astype(jnp.bfloat16), b_ref[...],
                preferred_element_type=jnp.float32)
    y = _silu(y * s_ref[...] + bi_ref[...])
    o_ref[0] = jnp.sum(y, axis=0, keepdims=True) * inv_hw


def _kan_feat_kernel(x_ref, g_ref, o_ref, *, order):
    """Emit [silu(x), b-spline bases] so base+spline reduce to one matmul."""
    x = x_ref[...]                      # (B, tin)
    xb = x[:, None, :]
    g = g_ref[...][None, :, :]          # (1, Gp, tin)
    bases = jnp.logical_and(xb >= g[:, :-1, :], xb < g[:, 1:, :]).astype(jnp.float32)
    for kk in range(1, order + 1):
        left = (xb - g[:, : -(kk + 1), :]) / (g[:, kk:-1, :] - g[:, : -(kk + 1), :])
        right = (g[:, kk + 1:, :] - xb) / (g[:, kk + 1:, :] - g[:, 1:(-kk), :])
        bases = left * bases[:, :-1, :] + right * bases[:, 1:, :]
    o_ref[:, 0:1, :] = _silu(x)[:, None, :]
    o_ref[:, 1:, :] = bases


# --------------------------------------------------------------------------
# Wrappers
# --------------------------------------------------------------------------

def matmul2d(a, w, scale=None, bias=None, act="none"):
    M, K = a.shape
    N = w.shape[1]
    if scale is None:
        scale = jnp.ones((N,), jnp.float32)
    if bias is None:
        bias = jnp.zeros((N,), jnp.float32)
    tm = M if M <= 512 else 256
    tk = _pick_tk(K)
    kern = functools.partial(_mm_kernel, act=act)
    return pl.pallas_call(
        kern,
        out_shape=jax.ShapeDtypeStruct((M, N), jnp.float32),
        grid_spec=pltpu.PrefetchScalarGridSpec(
            num_scalar_prefetch=0,
            grid=(pl.cdiv(M, tm), K // tk),
            in_specs=[
                pl.BlockSpec((tm, tk), lambda i, k: (i, k)),
                pl.BlockSpec((tk, N), lambda i, k: (k, 0)),
                pl.BlockSpec((1, N), lambda i, k: (0, 0)),
                pl.BlockSpec((1, N), lambda i, k: (0, 0)),
            ],
            out_specs=pl.BlockSpec((tm, N), lambda i, k: (i, 0)),
        ),
        compiler_params=pltpu.CompilerParams(
            dimension_semantics=("parallel", "arbitrary"),
            vmem_limit_bytes=VMEM_LIMIT,
        ),
    )(a, w.astype(jnp.bfloat16),
      scale.reshape(1, N).astype(jnp.float32),
      bias.reshape(1, N).astype(jnp.float32))


def conv1x1(x, w, scale, bias, act="none", gate=None, residual=None):
    """1x1 conv + folded BN (+ optional fused SE gate / residual); bf16 output."""
    NB, H, W, Cin = x.shape
    Cout = w.shape[1]
    HWs = H * W
    xf = x.reshape(NB, HWs, Cin)
    tm = _pick_tm_spatial(HWs)
    nm = pl.cdiv(HWs, tm)
    has_gate = gate is not None
    has_res = residual is not None

    in_specs = [pl.BlockSpec((1, tm, Cin), lambda n, i: (n, i, 0))]
    inputs = [xf]
    if has_gate:
        in_specs.append(pl.BlockSpec((1, 1, Cin), lambda n, i: (n, 0, 0)))
        inputs.append(gate.reshape(NB, 1, Cin).astype(jnp.float32))
    in_specs += [
        pl.BlockSpec((Cin, Cout), lambda n, i: (0, 0)),
        pl.BlockSpec((1, Cout), lambda n, i: (0, 0)),
        pl.BlockSpec((1, Cout), lambda n, i: (0, 0)),
    ]
    inputs += [w.astype(jnp.bfloat16),
               scale.reshape(1, Cout).astype(jnp.float32),
               bias.reshape(1, Cout).astype(jnp.float32)]
    if has_res:
        in_specs.append(pl.BlockSpec((1, tm, Cout), lambda n, i: (n, i, 0)))
        inputs.append(residual.reshape(NB, HWs, Cout))

    kern = functools.partial(_c1_kernel, act=act, has_gate=has_gate, has_res=has_res)
    out = pl.pallas_call(
        kern,
        out_shape=jax.ShapeDtypeStruct((NB, HWs, Cout), jnp.bfloat16),
        grid_spec=pltpu.PrefetchScalarGridSpec(
            num_scalar_prefetch=0,
            grid=(NB, nm),
            in_specs=in_specs,
            out_specs=pl.BlockSpec((1, tm, Cout), lambda n, i: (n, i, 0)),
        ),
        compiler_params=pltpu.CompilerParams(
            dimension_semantics=("parallel", "parallel"),
            vmem_limit_bytes=VMEM_LIMIT,
        ),
    )(*inputs)
    return out.reshape(NB, H, W, Cout)


def depthwise_conv_bn_silu(x, w_kkc, scale, bias, k, stride):
    """Depthwise conv + BN + SiLU.  Returns (y_bf16, pooled_or_None)."""
    NB, H, W, C = x.shape
    pad = (k - 1) // 2
    Hp, Wp = H + 2 * pad, W + 2 * pad
    tc = _pick_tc(C)
    with_pool = (stride == 1)    # SE pool must see the post-stride output
    kern = functools.partial(_dw_kernel, k=k, H=H, W=W, pad=pad,
                             inv_hw=1.0 / (H * W), with_pool=with_pool)
    if with_pool:
        out_shape = (jax.ShapeDtypeStruct((NB, H, W, C), jnp.bfloat16),
                     jax.ShapeDtypeStruct((NB, 1, C), jnp.float32))
        out_specs = (pl.BlockSpec((1, H, W, tc), lambda n, c: (n, 0, 0, c)),
                     pl.BlockSpec((1, 1, tc), lambda n, c: (n, 0, c)))
    else:
        out_shape = jax.ShapeDtypeStruct((NB, H, W, C), jnp.bfloat16)
        out_specs = pl.BlockSpec((1, H, W, tc), lambda n, c: (n, 0, 0, c))

    res = pl.pallas_call(
        kern,
        out_shape=out_shape,
        grid_spec=pltpu.PrefetchScalarGridSpec(
            num_scalar_prefetch=0,
            grid=(NB, C // tc),
            in_specs=[
                pl.BlockSpec((1, H, W, tc), lambda n, c: (n, 0, 0, c)),
                pl.BlockSpec((k * k, tc), lambda n, c: (0, c)),
                pl.BlockSpec((1, tc), lambda n, c: (0, c)),
                pl.BlockSpec((1, tc), lambda n, c: (0, c)),
            ],
            out_specs=out_specs,
            scratch_shapes=[pltpu.VMEM((Hp, Wp, tc), jnp.float32)],
        ),
        compiler_params=pltpu.CompilerParams(
            dimension_semantics=("parallel", "parallel"),
            vmem_limit_bytes=VMEM_LIMIT,
        ),
    )(x, w_kkc, scale.reshape(1, C), bias.reshape(1, C))

    if with_pool:
        y, pooled = res
        return y, pooled.reshape(NB, C)
    y = res
    # TODO(synk): subsample inside the kernel (strided taps) instead of the
    # XLA slice for the 4 stride-2 blocks.
    y = y[:, ::stride, ::stride, :]
    return y, None


def global_avgpool(x_nhwc):
    NB, H, W, C = x_nhwc.shape
    HWs = H * W
    xf = x_nhwc.reshape(NB, HWs, C)
    ts = _pick_ts(HWs)
    kern = functools.partial(_pool_kernel, inv_hw=1.0 / HWs)
    out = pl.pallas_call(
        kern,
        out_shape=jax.ShapeDtypeStruct((NB, 1, C), jnp.float32),
        grid_spec=pltpu.PrefetchScalarGridSpec(
            num_scalar_prefetch=0,
            grid=(NB, HWs // ts),
            in_specs=[pl.BlockSpec((1, ts, C), lambda n, s: (n, s, 0))],
            out_specs=pl.BlockSpec((1, 1, C), lambda n, s: (n, 0, 0)),
        ),
        compiler_params=pltpu.CompilerParams(
            dimension_semantics=("parallel", "arbitrary"),
            vmem_limit_bytes=VMEM_LIMIT,
        ),
    )(xf)
    return out.reshape(NB, C)


def se_gate(pooled, w1, b1, w2, b2):
    """Fused SE: sigmoid(fc2(silu(fc1(pooled)))); single tiny kernel."""
    NB, Ce = pooled.shape
    SQ = w1.shape[1]
    return pl.pallas_call(
        _se_kernel,
        out_shape=jax.ShapeDtypeStruct((NB, Ce), jnp.float32),
        grid_spec=pltpu.PrefetchScalarGridSpec(
            num_scalar_prefetch=0,
            grid=(1,),
            in_specs=[
                pl.BlockSpec((NB, Ce), lambda i: (0, 0)),
                pl.BlockSpec((Ce, SQ), lambda i: (0, 0)),
                pl.BlockSpec((1, SQ), lambda i: (0, 0)),
                pl.BlockSpec((SQ, Ce), lambda i: (0, 0)),
                pl.BlockSpec((1, Ce), lambda i: (0, 0)),
            ],
            out_specs=pl.BlockSpec((NB, Ce), lambda i: (0, 0)),
        ),
        compiler_params=pltpu.CompilerParams(
            dimension_semantics=("arbitrary",),
            vmem_limit_bytes=VMEM_LIMIT,
        ),
    )(pooled, w1, b1.reshape(1, SQ), w2, b2.reshape(1, Ce))


def head_conv_pool(x, w, scale, bias):
    """Fused head 1x1 conv + BN + SiLU + global avg pool -> (N, Cout) f32."""
    NB, H, W, Cin = x.shape
    Cout = w.shape[1]
    HWs = H * W
    xf = x.reshape(NB, HWs, Cin)
    kern = functools.partial(_head_pool_kernel, inv_hw=1.0 / HWs)
    out = pl.pallas_call(
        kern,
        out_shape=jax.ShapeDtypeStruct((NB, 1, Cout), jnp.float32),
        grid_spec=pltpu.PrefetchScalarGridSpec(
            num_scalar_prefetch=0,
            grid=(NB,),
            in_specs=[
                pl.BlockSpec((1, HWs, Cin), lambda n: (n, 0, 0)),
                pl.BlockSpec((Cin, Cout), lambda n: (0, 0)),
                pl.BlockSpec((1, Cout), lambda n: (0, 0)),
                pl.BlockSpec((1, Cout), lambda n: (0, 0)),
            ],
            out_specs=pl.BlockSpec((1, 1, Cout), lambda n: (n, 0, 0)),
        ),
        compiler_params=pltpu.CompilerParams(
            dimension_semantics=("parallel",),
            vmem_limit_bytes=VMEM_LIMIT,
        ),
    )(xf, w.astype(jnp.bfloat16),
      scale.reshape(1, Cout).astype(jnp.float32),
      bias.reshape(1, Cout).astype(jnp.float32))
    return out.reshape(NB, Cout)


def _extract_patches(x, kh, kw, stride, pad):
    # Only used for the 3x3 stem conv (cin=3, negligible traffic).
    # TODO(synk): fuse the stem 3x3 im2col into the kernel like the depthwise
    # path if it ever shows up in profiles.
    N, H, W, C = x.shape
    xp = jnp.pad(x, ((0, 0), (pad, pad), (pad, pad), (0, 0)))
    Ho = (H + 2 * pad - kh) // stride + 1
    Wo = (W + 2 * pad - kw) // stride + 1
    taps = []
    for i in range(kh):
        for j in range(kw):
            taps.append(xp[:, i:i + stride * Ho:stride, j:j + stride * Wo:stride, :])
    return jnp.stack(taps, axis=3), Ho, Wo   # (N, Ho, Wo, kh*kw, C)


def stem_conv(x, w27, scale, bias):
    patches, Ho, Wo = _extract_patches(x, 3, 3, 2, 1)
    NB, _, _, C = x.shape
    p4 = patches.reshape(NB, Ho, Wo, 9 * C)
    return conv1x1(p4, w27, scale, bias, act="silu")   # bf16 NHWC output


def mbconv(x, p, in_ch, out_ch, expand, k, stride):
    inp = x
    if expand != 1:
        x = conv1x1(x, p["exp_w"], p["exp_s"], p["exp_b"], act="silu")
    x, pooled = depthwise_conv_bn_silu(x, p["dw_w"], p["dw_s"], p["dw_b"], k, stride)
    if pooled is None:                       # stride-2: pool the strided output
        pooled = global_avgpool(x)
    gate = se_gate(pooled, p["se_w1"], p["se_b1"], p["se_w2"], p["se_b2"])
    res = inp if (stride == 1 and in_ch == out_ch) else None
    return conv1x1(x, p["proj_w"], p["proj_s"], p["proj_b"], act="none",
                   gate=gate, residual=res)


def kan_linear(x, p):
    order = p["spline_order"]
    B, In = x.shape
    Gp = p["grid_t"].shape[0]
    coeff = Gp - 1 - order
    tin = _pick_tk(In)
    kern = functools.partial(_kan_feat_kernel, order=order)
    feats = pl.pallas_call(
        kern,
        out_shape=jax.ShapeDtypeStruct((B, coeff + 1, In), jnp.float32),
        grid_spec=pltpu.PrefetchScalarGridSpec(
            num_scalar_prefetch=0,
            grid=(In // tin,),
            in_specs=[
                pl.BlockSpec((B, tin), lambda c: (0, c)),
                pl.BlockSpec((Gp, tin), lambda c: (0, c)),
            ],
            out_specs=pl.BlockSpec((B, coeff + 1, tin), lambda c: (0, 0, c)),
        ),
        compiler_params=pltpu.CompilerParams(
            dimension_semantics=("parallel",),
            vmem_limit_bytes=VMEM_LIMIT,
        ),
    )(x, p["grid_t"])
    # Single K-tiled matmul over [silu(x), bases] @ [base_w; spline_w_flat].
    return matmul2d(feats.reshape(B, (coeff + 1) * In), p["w_cat"])


# --------------------------------------------------------------------------
# EfficientNet-B1 architecture + synthetic (eval-mode) parameters
# --------------------------------------------------------------------------

# (expand_ratio, kernel, stride, in_ch, out_ch, repeats) -- B1 (width 1.0, depth 1.1)
B1_STAGES = [
    (1, 3, 1, 32, 16, 2),
    (6, 3, 2, 16, 24, 3),
    (6, 5, 2, 24, 40, 3),
    (6, 3, 2, 40, 80, 4),
    (6, 5, 1, 80, 112, 4),
    (6, 5, 2, 112, 192, 5),
    (6, 3, 1, 192, 320, 2),
]
STEM_CH = 32
HEAD_CH = 1280
NUM_CLASSES = 1000
CLS_PAD = 1024        # lane-dense classifier output, sliced back to 1000
SE_PAD = 128          # lane-dense SE squeeze dim (zero-padded, exact math)
KAN_HIDDEN = 512


def init_params(seed=0):
    base_key = jax.random.PRNGKey(seed)
    counter = [0]

    def nxt():
        counter[0] += 1
        return jax.random.fold_in(base_key, counter[0])

    def mat_w(rows, cols, fan_in):
        std = (2.0 / fan_in) ** 0.5
        return (jax.random.normal(nxt(), (rows, cols), jnp.float32) * std).astype(jnp.bfloat16)

    def bn_fold(c):
        eps = 1e-5
        gamma = jnp.ones((c,), jnp.float32)
        beta = jnp.zeros((c,), jnp.float32)
        mean = jnp.zeros((c,), jnp.float32)
        var = jnp.ones((c,), jnp.float32)
        scale = gamma / jnp.sqrt(var + eps)
        bias = beta - mean * scale
        return scale, bias

    params = {}
    s, b = bn_fold(STEM_CH)
    params["stem"] = {"w": mat_w(3 * 3 * 3, STEM_CH, 3 * 3 * 3), "s": s, "b": b}

    blocks = {}
    for si, (expand, k, stride, cin, cout, reps) in enumerate(B1_STAGES):
        for r in range(reps):
            ci = cin if r == 0 else cout
            ce = ci * expand
            sq = max(1, ci // 4)
            p = {}
            if expand != 1:
                p["exp_w"] = mat_w(ci, ce, ci)
                p["exp_s"], p["exp_b"] = bn_fold(ce)
            p["dw_w"] = (jax.random.normal(nxt(), (k * k, ce), jnp.float32)
                         * (2.0 / (k * k)) ** 0.5)
            p["dw_s"], p["dw_b"] = bn_fold(ce)
            # SE weights, squeeze dim zero-padded to SE_PAD lanes (exact math).
            w1 = jax.random.normal(nxt(), (ce, sq), jnp.float32) * (2.0 / ce) ** 0.5
            w2 = jax.random.normal(nxt(), (sq, ce), jnp.float32) * (2.0 / sq) ** 0.5
            p["se_w1"] = jnp.zeros((ce, SE_PAD), jnp.float32).at[:, :sq].set(w1).astype(jnp.bfloat16)
            p["se_b1"] = jnp.zeros((SE_PAD,), jnp.float32)
            p["se_w2"] = jnp.zeros((SE_PAD, ce), jnp.float32).at[:sq, :].set(w2).astype(jnp.bfloat16)
            p["se_b2"] = jnp.full((ce,), 1.0, jnp.float32)
            p["proj_w"] = mat_w(ce, cout, ce)
            p["proj_s"], p["proj_b"] = bn_fold(cout)
            blocks[f"s{si}_b{r}"] = p
    params["blocks"] = blocks

    last_c = B1_STAGES[-1][4]
    s, b = bn_fold(HEAD_CH)
    params["head"] = {"w": mat_w(last_c, HEAD_CH, last_c), "s": s, "b": b}

    def kan_init(in_f, out_f, grid_size=5, spline_order=3):
        h = 2.0 / grid_size  # grid_range [-1, 1]
        pts = jnp.arange(-spline_order, grid_size + spline_order + 1,
                         dtype=jnp.float32) * h - 1.0
        grid_t = jnp.broadcast_to(pts[:, None], (pts.shape[0], in_f)).astype(jnp.float32)
        base_w = jax.random.normal(nxt(), (in_f, out_f), jnp.float32) * (1.0 / in_f) ** 0.5
        coeff = grid_size + spline_order
        spline_w = jax.random.normal(nxt(), (out_f, in_f, coeff), jnp.float32) * 0.1
        spline_scaler = jax.random.normal(nxt(), (out_f, in_f), jnp.float32) * (1.0 / in_f) ** 0.5
        scaled = spline_w * spline_scaler[..., None]                 # (out, in, coeff)
        w_spline = jnp.transpose(scaled, (2, 1, 0)).reshape(coeff * in_f, out_f)
        # concat order must match the [silu(x), bases(coeff-major)] features
        w_cat = jnp.concatenate([base_w, w_spline], axis=0).astype(jnp.bfloat16)
        return {"grid_t": grid_t, "w_cat": w_cat, "spline_order": spline_order}

    params["kan1"] = kan_init(HEAD_CH, KAN_HIDDEN)
    params["kan2"] = kan_init(KAN_HIDDEN, HEAD_CH)

    w_cls = jax.random.normal(nxt(), (HEAD_CH, NUM_CLASSES), jnp.float32) * (1.0 / HEAD_CH) ** 0.5
    params["cls"] = {
        "w": jnp.zeros((HEAD_CH, CLS_PAD), jnp.float32).at[:, :NUM_CLASSES].set(w_cls).astype(jnp.bfloat16),
        "b": jnp.zeros((CLS_PAD,), jnp.float32),
    }
    return params


def forward(x_nchw, params):
    # `x.requires_grad = True` in the PyTorch forward is a no-op at inference.
    x = jnp.transpose(x_nchw.astype(jnp.float32), (0, 2, 3, 1))    # NCHW -> NHWC
    # ---- backbone: stem (3x3 s2 conv + BN + SiLU) ----
    x = stem_conv(x, params["stem"]["w"], params["stem"]["s"], params["stem"]["b"])
    # ---- backbone: MBConv stages ----
    for si, (expand, k, stride, cin, cout, reps) in enumerate(B1_STAGES):
        for r in range(reps):
            ci = cin if r == 0 else cout
            st = stride if r == 0 else 1
            x = mbconv(x, params["blocks"][f"s{si}_b{r}"], ci, cout, expand, k, st)
    # ---- backbone: head conv + global average pool (== flatten(avgpool)) ----
    x = head_conv_pool(x, params["head"]["w"], params["head"]["s"], params["head"]["b"])
    # ---- KAN layers ----
    x = kan_linear(x, params["kan1"])                              # (N, 512)
    x = kan_linear(x, params["kan2"])                              # (N, 1280)
    # ---- classifier (Dropout is identity at inference) + Linear ----
    logits = matmul2d(x, params["cls"]["w"], bias=params["cls"]["b"])
    return logits[:, :NUM_CLASSES]                                 # (N, 1000)


if __name__ == "__main__":
    params = init_params(0)
    key = jax.random.PRNGKey(0)
    x = jax.random.normal(key, (2, 3, 32, 32), jnp.float32)        # small NCHW batch
    out = forward(x, params)
    out = jax.block_until_ready(out)
    assert out.shape == (2, NUM_CLASSES), out.shape
    assert bool(jnp.all(jnp.isfinite(out)))
    print("KERNEL_OK")
</pallas_src>

<mosaic_0001>
module attributes {stable_mosaic.version = 11 : i64} {
  func.func @_c1_kernel(%arg0: i32, %arg1: i32, %arg2: memref<1x256x27xf32, #tpu.memory_space<vmem>>, %arg3: memref<27x32xbf16, #tpu.memory_space<vmem>>, %arg4: memref<1x32xf32, #tpu.memory_space<vmem>>, %arg5: memref<1x32xf32, #tpu.memory_space<vmem>>, %arg6: memref<1x256x32xbf16, #tpu.memory_space<vmem>>) attributes {dimension_semantics = [#tpu.dimension_semantics<parallel>, #tpu.dimension_semantics<parallel>], iteration_bounds = array<i64: 2, 1>, scalar_prefetch = 0 : i64, scratch_operands = 0 : i64, tpu.core_type = #tpu.core_type<tc>, window_params = [{transform_indices = @transform_0, window_bounds = array<i64: 1, 256, 27>}, {pipeline_mode = #tpu.pipeline_mode<synchronous>, transform_indices = @transform_1, window_bounds = array<i64: 27, 32>}, {pipeline_mode = #tpu.pipeline_mode<synchronous>, transform_indices = @transform_2, window_bounds = array<i64: 1, 32>}, {pipeline_mode = #tpu.pipeline_mode<synchronous>, transform_indices = @transform_3, window_bounds = array<i64: 1, 32>}, {transform_indices = @transform_4, window_bounds = array<i64: 1, 256, 32>}]} {
    %c0 = arith.constant 0 : index
    %c0_0 = arith.constant 0 : index
    %c0_1 = arith.constant 0 : index
    %0 = vector.load %arg2[%c0, %c0_0, %c0_1] : memref<1x256x27xf32, #tpu.memory_space<vmem>>, vector<1x256x27xf32>
    %1 = vector.shape_cast %0 : vector<1x256x27xf32> to vector<256x27xf32>
    %2 = arith.truncf %1 : vector<256x27xf32> to vector<256x27xbf16>
    %c0_2 = arith.constant 0 : index
    %c0_3 = arith.constant 0 : index
    %3 = vector.load %arg3[%c0_2, %c0_3] : memref<27x32xbf16, #tpu.memory_space<vmem>>, vector<27x32xbf16>
    %cst = arith.constant dense<0.000000e+00> : vector<256x32xf32>
    %4 = tpu.matmul %2, %3, %cst {dimension_numbers = #tpu.dot_dimension_numbers<[1], [0], [0], [1], [0, 0, 1, 1], [], []>} : vector<256x27xbf16>, vector<27x32xbf16>, vector<256x32xf32> -> vector<256x32xf32>
    %c0_4 = arith.constant 0 : index
    %c0_5 = arith.constant 0 : index
    %5 = vector.load %arg4[%c0_4, %c0_5] : memref<1x32xf32, #tpu.memory_space<vmem>>, vector<1x32xf32>
    %6 = vector.broadcast %5 : vector<1x32xf32> to vector<256x32xf32>
    %7 = arith.mulf %4, %6 : vector<256x32xf32>
    %c0_6 = arith.constant 0 : index
    %c0_7 = arith.constant 0 : index
    %8 = vector.load %arg5[%c0_6, %c0_7] : memref<1x32xf32, #tpu.memory_space<vmem>>, vector<1x32xf32>
    %9 = vector.broadcast %8 : vector<1x32xf32> to vector<256x32xf32>
    %10 = arith.addf %7, %9 : vector<256x32xf32>
    %11 = math.absf %10 : vector<256x32xf32>
    %cst_8 = arith.constant 0.000000e+00 : f32
    %12 = vector.broadcast %cst_8 : f32 to vector<256x32xf32>
    %13 = arith.subf %12, %11 : vector<256x32xf32>
    %14 = math.exp %13 : vector<256x32xf32>
    %cst_9 = arith.constant 1.000000e+00 : f32
    %15 = vector.broadcast %cst_9 : f32 to vector<256x32xf32>
    %16 = arith.addf %15, %14 : vector<256x32xf32>
    %17 = tpu.reciprocal %16 {approx = true} : vector<256x32xf32> -> vector<256x32xf32>
    %cst_10 = arith.constant 0.000000e+00 : f32
    %18 = vector.broadcast %cst_10 : f32 to vector<256x32xf32>
    %19 = arith.cmpf oge, %10, %18 : vector<256x32xf32>
    %20 = arith.mulf %14, %17 : vector<256x32xf32>
    %21 = arith.select %19, %17, %20 : vector<256x32xi1>, vector<256x32xf32>
    %22 = arith.mulf %10, %21 : vector<256x32xf32>
    %23 = arith.truncf %22 : vector<256x32xf32> to vector<256x32xbf16>
    %c0_11 = arith.constant 0 : index
    %c0_12 = arith.constant 0 : index
    %c0_13 = arith.constant 0 : index
    %24 = vector.load %arg6[%c0_11, %c0_12, %c0_13] : memref<1x256x32xbf16, #tpu.memory_space<vmem>>, vector<1x256x32xbf16>
    %25 = vector.shape_cast %24 : vector<1x256x32xbf16> to vector<256x32xbf16>
    %26 = vector.shape_cast %23 : vector<256x32xbf16> to vector<1x256x32xbf16>
    tpu.vector_store %arg6[%c0_11, %c0_12, %c0_13], %26 {strides = array<i32>} : memref<1x256x32xbf16, #tpu.memory_space<vmem>>, vector<1x256x32xbf16>,
    return
  }
  func.func @transform_0(%arg0: i32, %arg1: i32) -> (i32, i32, i32) {
    %c0_i32 = arith.constant 0 : i32
    %c0_i32_0 = arith.constant 0 : i32
    return %arg0, %arg1, %c0_i32 : i32, i32, i32
  }
  func.func @transform_1(%arg0: i32, %arg1: i32) -> (i32, i32) {
    %c0_i32 = arith.constant 0 : i32
    %c0_i32_0 = arith.constant 0 : i32
    %c0_i32_1 = arith.constant 0 : i32
    return %c0_i32, %c0_i32_0 : i32, i32
  }
  func.func @transform_2(%arg0: i32, %arg1: i32) -> (i32, i32) {
    %c0_i32 = arith.constant 0 : i32
    %c0_i32_0 = arith.constant 0 : i32
    %c0_i32_1 = arith.constant 0 : i32
    return %c0_i32, %c0_i32_0 : i32, i32
  }
  func.func @transform_3(%arg0: i32, %arg1: i32) -> (i32, i32) {
    %c0_i32 = arith.constant 0 : i32
    %c0_i32_0 = arith.constant 0 : i32
    %c0_i32_1 = arith.constant 0 : i32
    return %c0_i32, %c0_i32_0 : i32, i32
  }
  func.func @transform_4(%arg0: i32, %arg1: i32) -> (i32, i32, i32) {
    %c0_i32 = arith.constant 0 : i32
    %c0_i32_0 = arith.constant 0 : i32
    return %arg0, %arg1, %c0_i32 : i32, i32, i32
  }
}

</mosaic_0001>

<bundles_post_ra>
// kernel: tpu_custom_call.1
= control target key start
LH: loop header
LB: loop body
LE: loop exit
PB: predicated region body
PF: predicated region fallthrough
CT: control target
= control target key end

     0   :  { %s1524_s15 = smov 0   ;;  %s1526_s16 = smov 0   ;;  %s2097_s0 = inlined_call_operand.vmem [shape: f32[2,256,27], index: 0, kind: input, shape index: {}]   ;;  %s2098_s1 = inlined_call_operand.vmem [shape: bf16[27,32], index: 1, kind: input, shape index: {}]   ;;  %s2099_s2 = inlined_call_operand.vmem [shape: f32[1,32], index: 2, kind: input, shape index: {}]   ;;  %s2100_s3 = inlined_call_operand.vmem [shape: f32[1,32], index: 3, kind: input, shape index: {}]   ;;  %s2101_s4 = inlined_call_operand.vmem [shape: bf16[2,256,32], index: 4, kind: output, shape index: {}]  }
   0x1   :  { %s1528_s17 = smov 0  }
   0x2 LB: > { %s26_s18 = sadd.s32 1, %s1492_s16  ;;  %p1168_p0 = scmp.ge.s32.totalorder %s1496_s17, 1  ;;  %s1496_s17 = sphi %s1528_s17, %s14_s17   ;;  %s1492_s16 = sphi %s1526_s16, %s2103_s16   ;;  %s1488_s15 = sphi %s1524_s15, %s2102_s15  }
   0x3   : > { %p28_p1 = scmp.ge.s32.totalorder %s26_s18, 2  ;;  %p183_p2 = scmp.lt.s32.totalorder %s1496_s17, 3 }
   0x5   : > { %s2105_s18 = smov (%p28_p1, %s26_s18), 0  ;;  %p184_p3 = pnand %p1168_p0, %p183_p2 }
   0x6   : > { %v1344_v0 = vld [vmem:[%s2098_s1] sm:$0xff] (!%p184_p3)   ;;  %vm350_vm0 = vcmask (!%p184_p3), 1044480   ;;  %v1345_v1 = vld [vmem:[%s2098_s1 + $0x8] sm:$0x3f] (!%p184_p3)   ;;  %vm351_vm1 = vcmask (!%p184_p3), 1045504   ;;  %p218_p4 = scmp.lt.s32.totalorder (!%p184_p3), %s1488_s15, 1 }
   0x7   : > { %187 = sbr.rel (%p184_p3) target bundleno = 361 (0x169), region = 36  ;;  %1279 = vmatprep.subr.bf16.mxu0 (!%p184_p3), %v1344_v0  ;;  %1315 = vmatprep.subr.bf16.mxu1 (!%p184_p3), %v1344_v0  ;;  %v1498_v2 = vmov (!%p184_p3), 65535   ;;  %vm301_vm2 = vcmask (!%p184_p3), 220160   ;;  %v1607_v54 = vld [vmem:[%s2099_s2] ss:$0 sm:$0xff] (!%p184_p3)  ;;  %vm1044_vm6 = vcmask (!%p184_p3), 257024  }
   0x8   : > { %1280 = vmatpush3.bf16.msra.mxu0 (!%p184_p3), %v1344_v0  ;;  %1317 = vmatpush3.bf16.msra.mxu1 (!%p184_p3), %v1344_v0  ;;  %v352_v3 = vsel (!%p184_p3), %vm350_vm0, 4294967295, %v1498_v2  ;;  %v1612_v56 = vld [vmem:[%s2100_s3] ss:$0 sm:$0xff] (!%p184_p3) }
   0x9   : > { %v353_v4 = vsel (!%p184_p3), %vm351_vm1, %v352_v3, 0 }
   0xa   : > { %v355_v5 = vand.u32 (!%p184_p3), %v1345_v1, %v353_v4 }
   0xc   : > { %1281 = vmatprep.subr.bf16.mxu0 (!%p184_p3), %v355_v5  ;;  %1316 = vmatprep.subr.bf16.mxu1 (!%p184_p3), %v355_v5 }
   0xd   : > { %1282 = vmatpush3.bf16.msra.mxu0 (!%p184_p3), %v355_v5  ;;  %1318 = vmatpush3.bf16.msra.mxu1 (!%p184_p3), %v355_v5 }
   0xe   : > { %s2107_s15 = smov (!%p218_p4, %s1488_s15), 1 }
   0xf   : > { %s1227_s23 = sshll.u32 %s2107_s15, 8  ;;  %s1228_s5 = sshll.u32 %s2107_s15, 7 }
  0x10   : > { %s1554_s26 = scalar_lea.vmem %s2097_s0, %s1227_s23  ;;  %s1793_s8 = scalar_lea.vmem %s2101_s4, %s1228_s5 }
  0x11   : > { %v238_v6 = vld [vmem:[%s1554_s26] sm:$0xff]  ;;  %v239_v7 = vld [vmem:[%s1554_s26 + $0x8] sm:$0xff]  ;;  %v240_v11 = vld [vmem:[%s1554_s26 + $0x10] sm:$0xff] }
  0x12   : > { %v254_v8 = vld [vmem:[%s1554_s26 + $0x80] sm:$0xff]  ;;  %v270_v9 = vpack.c.bf16 %v239_v7, %v238_v6  ;;  %v255_v10 = vld [vmem:[%s1554_s26 + $0x88] sm:$0xff]  ;;  %v241_v12 = vld [vmem:[%s1554_s26 + $0x18] sm:$0xff] }
  0x13   : > { %v278_v13 = vpack.c.bf16 %v255_v10, %v254_v8  ;;  %v271_v14 = vpack.c.bf16 %v241_v12, %v240_v11  ;;  %v256_v15 = vld [vmem:[%s1554_s26 + $0x90] sm:$0xff]  ;;  %v257_v16 = vld [vmem:[%s1554_s26 + $0x98] sm:$0xff]  ;;  %v242_v17 = vld [vmem:[%s1554_s26 + $0x20] sm:$0xff] }
  0x14   : > { %1283 = vmatprep.mubr.msk.bf16.mxu0 %vm301_vm2, %v270_v9  ;;  %v279_v18 = vpack.c.bf16 %v257_v16, %v256_v15  ;;  %v243_v19 = vld [vmem:[%s1554_s26 + $0x28] sm:$0xff]  ;;  %v258_v20 = vld [vmem:[%s1554_s26 + $0xa0] sm:$0xff]  ;;  %v244_v24 = vld [vmem:[%s1554_s26 + $0x30] sm:$0xff] }
  0x15   : > { %v259_v21 = vld [vmem:[%s1554_s26 + $0xa8] sm:$0xff]  ;;  %1299 = vmatprep.mubr.msk.bf16.mxu1 %vm301_vm2, %v278_v13  ;;  %1284 = vmatmul.mubr.msk.bf16.vlgmr.msra.gmra.mrb[0].mxu0 %vm301_vm2, %v271_v14  ;;  %v272_v22 = vpack.c.bf16 %v243_v19, %v242_v17  ;;  %v245_v25 = vld [vmem:[%s1554_s26 + $0x38] sm:$0xff]  ;;  %v260_v26 = vld [vmem:[%s1554_s26 + $0xb0] sm:$0xff] }
  0x16   : > { %v280_v23 = vpack.c.bf16 %v259_v21, %v258_v20  ;;  %1300 = vmatmul.mubr.msk.bf16.vlgmr.msra.gmra.mrb[0].mxu1 %vm301_vm2, %v279_v18  ;;  %v261_v27 = vld [vmem:[%s1554_s26 + $0xb8] sm:$0xff]  ;;  %v246_v28 = vld [vmem:[%s1554_s26 + $0x40] sm:$0xff]  ;;  %v247_v29 = vld [vmem:[%s1554_s26 + $0x48] sm:$0xff]  ;;  %v273_v32 = vpack.c.bf16 %v245_v25, %v244_v24 }
  0x17   : > { %1287 = vmatprep.mubr.msk.bf16.mxu0 %vm301_vm2, %v272_v22  ;;  %v262_v30 = vld [vmem:[%s1554_s26 + $0xc0] sm:$0xff]  ;;  %v263_v31 = vld [vmem:[%s1554_s26 + $0xc8] sm:$0xff]  ;;  %v281_v33 = vpack.c.bf16 %v261_v27, %v260_v26  ;;  %v274_v34 = vpack.c.bf16 %v247_v29, %v246_v28  ;;  %v248_v36 = vld [vmem:[%s1554_s26 + $0x50] sm:$0xff] }
  0x18   : > { %1303 = vmatprep.mubr.msk.bf16.mxu1 %vm301_vm2, %v280_v23  ;;  %v282_v35 = vpack.c.bf16 %v263_v31, %v262_v30  ;;  %v249_v37 = vld [vmem:[%s1554_s26 + $0x58] sm:$0xff]  ;;  %v264_v38 = vld [vmem:[%s1554_s26 + $0xd0] sm:$0xff]  ;;  %v250_v40 = vld [vmem:[%s1554_s26 + $0x60] sm:$0xff] }
  0x19   : > { %v265_v39 = vld [vmem:[%s1554_s26 + $0xd8] sm:$0xff]  ;;  %v251_v41 = vld [vmem:[%s1554_s26 + $0x68] sm:$0xff]  ;;  %v266_v42 = vld [vmem:[%s1554_s26 + $0xe0] sm:$0xff]  ;;  %v275_v44 = vpack.c.bf16 %v249_v37, %v248_v36 }
  0x1a   : > { %v267_v43 = vld [vmem:[%s1554_s26 + $0xe8] sm:$0xff]  ;;  %v283_v45 = vpack.c.bf16 %v265_v39, %v264_v38  ;;  %v276_v46 = vpack.c.bf16 %v251_v41, %v250_v40  ;;  %v252_v48 = vld [vmem:[%s1554_s26 + $0x70] sm:$0xff]  ;;  %v253_v49 = vld [vmem:[%s1554_s26 + $0x78] sm:$0xff] }
  0x1b   : > { %v284_v47 = vpack.c.bf16 %v267_v43, %v266_v42  ;;  %v268_v50 = vld [vmem:[%s1554_s26 + $0xf0] sm:$0xff]  ;;  %v269_v51 = vld [vmem:[%s1554_s26 + $0xf8] sm:$0xff]  ;;  %v277_v52 = vpack.c.bf16 %v253_v49, %v252_v48 }
  0x1c   : > { %v285_v53 = vpack.c.bf16 %v269_v51, %v268_v50 }
  0x1d   : > { %1288 = vmatmul.mubr.msk.bf16.gmra.mrb[4].mxu0 %vm301_vm2, %v273_v32 }
  0x1e   : > { %1304 = vmatmul.mubr.msk.bf16.gmra.mrb[4].mxu1 %vm301_vm2, %v281_v33  ;;  %1291 = vmatprep.mubr.msk.bf16.mxu0 %vm301_vm2, %v274_v34 }
  0x1f   : > { %1307 = vmatprep.mubr.msk.bf16.mxu1 %vm301_vm2, %v282_v35 }
  0x25   : > { %1292 = vmatmul.mubr.msk.bf16.gmra.mrb[8].mxu0 %vm301_vm2, %v275_v44 }
  0x26   : > { %1308 = vmatmul.mubr.msk.bf16.gmra.mrb[8].mxu1 %vm301_vm2, %v283_v45  ;;  %1295 = vmatprep.mubr.msk.bf16.mxu0 %vm301_vm2, %v276_v46 }
  0x27   : > { %1311 = vmatprep.mubr.msk.bf16.mxu1 %vm301_vm2, %v284_v47 }
  0x2d   : > { %1296 = vmatmul.mubr.msk.bf16.gmra.mrb[12].mxu0 %vm301_vm2, %v277_v52 }
  0x2e   : > { %1312 = vmatmul.mubr.msk.bf16.gmra.mrb[12].mxu1 %vm301_vm2, %v285_v53 }
  0xe8   : > { %v1285_v55 = vpop.f32.mrb[0].mxu0 }
  0xe9   : > { %v527_v57 = vmul.f32 %v1285_v55, %v1607_v54  ;;  %v1301_v58 = vpop.f32.mrb[0].mxu1  ;;  %v391_v59 = vpop.f32.mrb[1].mxu0 }
  0xea   : > { %v543_v60 = vmul.f32 %v1301_v58, %v1607_v54  ;;  %v525_v61 = vmul.f32 %v1607_v54, %v391_v59  ;;  %v455_v62 = vpop.f32.mrb[1].mxu1  ;;  %v1286_v63 = vpop.f32.mrb[2].mxu0 }
  0xeb   : > { %v1618_v0 = vadd.f32 %v1612_v56, %v527_v57  ;;  %v541_v1 = vmul.f32 %v1607_v54, %v455_v62  ;;  %v528_v2 = vmul.f32 %v1286_v63, %v1607_v54  ;;  %v1302_v3 = vpop.f32.mrb[2].mxu1  ;;  %v394_v4 = vpop.f32.mrb[3].mxu0 }
  0xec   : > { %v1623_v5 = vadd.f32 %v1612_v56, %v543_v60  ;;  %v1626_v6 = vadd.f32 %v1612_v56, %v525_v61  ;;  %v544_v7 = vmul.f32 %v1302_v3, %v1607_v54  ;;  %v458_v8 = vpop.f32.mrb[3].mxu1  ;;  %v526_v12 = vmul.f32 %v1607_v54, %v394_v4 }
  0xed   : > { %v598_v9 = vand.u32 2147483647, %v1618_v0  ;;  %v1631_v10 = vadd.f32 %v1612_v56, %v541_v1  ;;  %v1634_v11 = vadd.f32 %v1612_v56, %v528_v2  ;;  %v542_v31 = vmul.f32 %v1607_v54, %v458_v8 }
  0xee   : > { %v614_v13 = vand.u32 2147483647, %v1623_v5  ;;  %v596_v14 = vand.u32 2147483647, %v1626_v6  ;;  %v1642_v20 = vadd.f32 %v1612_v56, %v544_v7  ;;  %v1645_v25 = vadd.f32 %v1612_v56, %v526_v12 }
  0xef   : > { %v630_v15 = vsub.f32 0.0, %v598_v9  ;;  %v612_v16 = vand.u32 2147483647, %v1631_v10  ;;  %v599_v17 = vand.u32 2147483647, %v1634_v11  ;;  %v1651_v39 = vadd.f32 %v1612_v56, %v542_v31 }
  0xf0   : > { %v646_v18 = vsub.f32 0.0, %v614_v13  ;;  %v628_v19 = vsub.f32 0.0, %v596_v14  ;;  %v1289_v21 = vpop.f32.mrb[4].mxu0  ;;  %v615_v30 = vand.u32 2147483647, %v1642_v20  ;;  %vm790_vm3 = vcmp.ge.f32.partialorder %v1618_v0, 0.0 }
  0xf1   : > { %v664_v22 = vmul.f32 1.442695, %v630_v15  ;;  %v644_v23 = vsub.f32 0.0, %v612_v16  ;;  %v631_v24 = vsub.f32 0.0, %v599_v17  ;;  %v1305_v26 = vpop.f32.mrb[4].mxu1  ;;  %v407_v27 = vpop.f32.mrb[5].mxu0  ;;  %v531_v40 = vmul.f32 %v1289_v21, %v1607_v54 }
  0xf2   : > { %v696_v28 = vmul.f32 1.442695, %v646_v18  ;;  %v660_v29 = vmul.f32 1.442695, %v628_v19  ;;  %v471_v34 = vpop.f32.mrb[5].mxu1  ;;  %v647_v35 = vsub.f32 0.0, %v615_v30  ;;  %v547_v41 = vmul.f32 %v1305_v26, %v1607_v54 }
  0xf3   : > { %1346 = vpow2.f32 %v664_v22  ;;  %v692_v32 = vmul.f32 1.442695, %v644_v23  ;;  %v666_v33 = vmul.f32 1.442695, %v631_v24  ;;  %v597_v36 = vand.u32 2147483647, %v1645_v25 }
  0xf4   : > { %1348 = vpow2.f32 %v696_v28  ;;  %v1290_v37 = vpop.f32.mrb[6].mxu0  ;;  %v1306_v38 = vpop.f32.mrb[6].mxu1  ;;  %v698_v44 = vmul.f32 1.442695, %v647_v35  ;;  %v529_v46 = vmul.f32 %v1607_v54, %v407_v27  ;;  %v613_v47 = vand.u32 2147483647, %v1651_v39 }
  0xf5   : > { %1350 = vpow2.f32 %v660_v29  ;;  %v1655_v42 = vpop.f32.mrb[7].mxu0  ;;  %v1657_v43 = vpop.f32.mrb[7].mxu1  ;;  %v629_v45 = vsub.f32 0.0, %v597_v36  ;;  %v1662_v48 = vadd.f32 %v1612_v56, %v531_v40  ;;  %v1665_v50 = vadd.f32 %v1612_v56, %v547_v41 }
  0xf6   : > { %1352 = vpow2.f32 %v692_v32  ;;  %v1668_v51 = vadd.f32 %v1612_v56, %v529_v46  ;;  %v645_v53 = vsub.f32 0.0, %v613_v47  ;;  %v545_v57 = vmul.f32 %v1607_v54, %v471_v34 }
  0xf7   : > { %1354 = vpow2.f32 %v666_v33  ;;  %v662_v49 = vmul.f32 1.442695, %v629_v45  ;;  %v602_v55 = vand.u32 2147483647, %v1662_v48  ;;  %v618_v60 = vand.u32 2147483647, %v1665_v50 }
  0xf8   : > { %1356 = vpow2.f32 %v698_v44  ;;  %v1293_v52 = vpop.f32.mrb[8].mxu0  ;;  %v600_v61 = vand.u32 2147483647, %v1668_v51  ;;  %v694_v63 = vmul.f32 1.442695, %v645_v53  ;;  %v1681_v2 = vadd.f32 %v1612_v56, %v545_v57 }
  0xf9   : > { %v1672_v58 = vpop.f32.mrb[8].mxu1  ;;  %v1674_v59 = vpop.f32.mrb[9].mxu0  ;;  %1358 = vpow2.f32 %v662_v49  ;;  %v634_v1 = vsub.f32 0.0, %v602_v55  ;;  %v650_v7 = vsub.f32 0.0, %v618_v60  ;;  %v532_v8 = vmul.f32 %v1290_v37, %v1607_v54 }
  0xfa   : > { %v1678_v62 = vpop.f32.mrb[9].mxu1  ;;  %v1683_v3 = vpop.f32.mrb[10].mxu0  ;;  %v548_v9 = vmul.f32 %v1306_v38, %v1607_v54  ;;  %1360 = vpow2.f32 %v694_v63  ;;  %v616_v16 = vand.u32 2147483647, %v1681_v2  ;;  %v632_v19 = vsub.f32 0.0, %v600_v61 }
  0xfb   : > { %v1685_v4 = vpop.f32.mrb[10].mxu1  ;;  %v1689_v12 = vpop.f32.mrb[11].mxu0  ;;  %v672_v15 = vmul.f32 1.442695, %v634_v1  ;;  %v1700_v21 = vadd.f32 %v1612_v56, %v532_v8  ;;  %v704_v28 = vmul.f32 1.442695, %v650_v7  ;;  %v530_v46 = vmul.f32 %v1607_v54, %v1655_v42 }
  0xfc   : > { %v1691_v13 = vpop.f32.mrb[11].mxu1  ;;  %v1706_v24 = vadd.f32 %v1612_v56, %v548_v9  ;;  %v648_v33 = vsub.f32 0.0, %v616_v16  ;;  %v668_v38 = vmul.f32 1.442695, %v632_v19  ;;  %v546_v57 = vmul.f32 %v1607_v54, %v1657_v43 }
  0xfd   : > { %v1693_v14 = vpop.eup %1346  ;;  %1362 = vpow2.f32 %v672_v15  ;;  %v603_v29 = vand.u32 2147483647, %v1700_v21  ;;  %v535_v60 = vmul.f32 %v1293_v52, %v1607_v54  ;;  %vm806_vm4 = vcmp.ge.f32.partialorder %v1623_v5, 0.0 }
  0xfe   : > { %v1696_v17 = vpop.eup %1348  ;;  %v726_v18 = vadd.f32 1.0, %v1693_v14  ;;  %v619_v34 = vand.u32 2147483647, %v1706_v24  ;;  %v700_v1 = vmul.f32 1.442695, %v648_v33  ;;  %v1747_v7 = vadd.f32 %v1612_v56, %v530_v46 }
  0xff   : > { %v1702_v22 = vpop.eup %1350  ;;  %v742_v23 = vadd.f32 1.0, %v1696_v17  ;;  %v635_v45 = vsub.f32 0.0, %v603_v29  ;;  %vm788_vm5 = vcmp.ge.f32.partialorder %v1626_v6, 0.0  ;;  %v1751_v43 = vadd.f32 %v1612_v56, %v546_v57 }
 0x100   : > { %v1708_v26 = vpop.eup %1352  ;;  %1364 = vrcp.f32 %v726_v18  ;;  %v724_v27 = vadd.f32 1.0, %v1702_v22  ;;  %v1712_v30 = vpop.f32.mrb[12].mxu0  ;;  %v651_v55 = vsub.f32 0.0, %v619_v34  ;;  %v1754_v52 = vadd.f32 %v1612_v56, %v535_v60 }
 0x101   : > { %v1714_v31 = vpop.eup %1354  ;;  %1366 = vrcp.f32 %v742_v23  ;;  %v740_v32 = vadd.f32 1.0, %v1708_v26  ;;  %v1718_v35 = vpop.f32.mrb[12].mxu1  ;;  %v551_v8 = vmul.f32 %v1672_v58, %v1607_v54  ;;  %vm804_vm7 = vcmp.ge.f32.partialorder %v1631_v10, 0.0 }
 0x102   : > { %v1720_v36 = vpop.eup %1356  ;;  %1368 = vrcp.f32 %v724_v27  ;;  %v727_v37 = vadd.f32 1.0, %v1714_v31  ;;  %v1723_v40 = vpop.f32.mrb[13].mxu0  ;;  %v674_v15 = vmul.f32 1.442695, %v635_v45  ;;  %v601_v16 = vand.u32 2147483647, %v1747_v7 }
 0x103   : > { %v1725_v41 = vpop.f32.mrb[13].mxu1  ;;  %1370 = vrcp.f32 %v740_v32  ;;  %v743_v44 = vadd.f32 1.0, %v1720_v36  ;;  %v1730_v47 = vpop.f32.mrb[14].mxu0  ;;  %vm791_vm8 = vcmp.ge.f32.partialorder %v1634_v11, 0.0  ;;  %v706_v19 = vmul.f32 1.442695, %v651_v55 }
 0x104   : > { %v1732_v49 = vpop.f32.mrb[14].mxu1  ;;  %v1734_v53 = vpop.eup %1358  ;;  %1372 = vrcp.f32 %v727_v37  ;;  %v617_v23 = vand.u32 2147483647, %v1751_v43  ;;  %vm807_vm9 = vcmp.ge.f32.partialorder %v1642_v20, 0.0  ;;  %v633_v58 = vsub.f32 0.0, %v601_v16 }
 0x105   : > { %v1740_v61 = vpop.f32.mrb[15].mxu0  ;;  %v1742_v63 = vpop.f32.mrb[15].mxu1  ;;  %1374 = vrcp.f32 %v743_v44  ;;  %v725_v42 = vadd.f32 1.0, %v1734_v53  ;;  %v1771_v29 = vmul.f32 %v1607_v54, %v1674_v59  ;;  %v1775_v37 = vadd.f32 %v1612_v56, %v551_v8 }
 0x106   : > { %1376 = vpow2.f32 %v704_v28  ;;  %v1758_v9 = vpop.eup %1360  ;;  %v606_v28 = vand.u32 2147483647, %v1754_v52  ;;  %v649_v34 = vsub.f32 0.0, %v617_v23  ;;  %vm789_vm10 = vcmp.ge.f32.partialorder %v1645_v25, 0.0 }
 0x107   : > { %1378 = vrcp.f32 %v725_v42  ;;  %v741_v18 = vadd.f32 1.0, %v1758_v9  ;;  %v1765_v27 = vpop.eup %1362  ;;  %v670_v45 = vmul.f32 1.442695, %v633_v58  ;;  %v622_v60 = vand.u32 2147483647, %v1775_v37 }
 0x108   : > { %1380 = vpow2.f32 %v668_v38  ;;  %v730_v33 = vadd.f32 1.0, %v1765_v27  ;;  %v638_v46 = vsub.f32 0.0, %v606_v28  ;;  %v702_v57 = vmul.f32 1.442695, %v649_v34 }
 0x109   : > { %1382 = vpow2.f32 %v700_v1  ;;  %vm805_vm11 = vcmp.ge.f32.partialorder %v1651_v39, 0.0  ;;  %vm794_vm12 = vcmp.ge.f32.partialorder %v1662_v48, 0.0  ;;  %vm810_vm13 = vcmp.ge.f32.partialorder %v1665_v50, 0.0 }
 0x10a   : > { %v1365_v32 = vpop.eup %1364  ;;  %1384 = vrcp.f32 %v741_v18  ;;  %vm792_vm14 = vcmp.ge.f32.partialorder %v1668_v51, 0.0  ;;  %vm808_vm15 = vcmp.ge.f32.partialorder %v1681_v2, 0.0  ;;  %vm795_vm0 = vcmp.ge.f32.partialorder %v1700_v21, 0.0 }
 0x10b   : > { %v1367_v38 = vpop.eup %1366  ;;  %v822_v44 = vmul.f32 %v1365_v32, %v1693_v14  ;;  %1386 = vpow2.f32 %v674_v15  ;;  %v680_v14 = vmul.f32 1.442695, %v638_v46  ;;  %vm811_vm1 = vcmp.ge.f32.partialorder %v1706_v24, 0.0 }
 0x10c   : > { %v1369_v55 = vpop.eup %1368  ;;  %v838_v59 = vmul.f32 %v1367_v38, %v1696_v17  ;;  %1388 = vrcp.f32 %v730_v33  ;;  %vm793_vm2 = vcmp.ge.f32.partialorder %v1747_v7, 0.0 }
 0x10d   : > { %v1371_v42 = vpop.eup %1370  ;;  %v854_v1 = vsel %vm790_vm3, %v1365_v32, %v822_v44  ;;  %v820_v8 = vmul.f32 %v1369_v55, %v1702_v22  ;;  %1390 = vpow2.f32 %v706_v19  ;;  %vm809_vm3 = vcmp.ge.f32.partialorder %v1751_v43, 0.0 }
 0x10e   : > { %v1373_v16 = vpop.eup %1372  ;;  %v886_v15 = vmul.f32 %v854_v1, %v1618_v0  ;;  %v870_v18 = vsel %vm806_vm4, %v1367_v38, %v838_v59  ;;  %v836_v17 = vmul.f32 %v1371_v42, %v1708_v26  ;;  %1392 = vpow2.f32 %v670_v45 }
 0x10f   : > { %v1375_v23 = vpop.eup %1374  ;;  %v902_v22 = vmul.f32 %v870_v18, %v1623_v5  ;;  %v852_v0 = vsel %vm788_vm5, %v1369_v55, %v820_v8  ;;  %v823_v19 = vmul.f32 %v1373_v16, %v1714_v31  ;;  %1394 = vpow2.f32 %v702_v57 }
 0x110   : > { %v1799_v58 = vpop.eup %1376  ;;  %v1231_v26 = vpack.c.bf16 %v886_v15, %v886_v15  ;;  %v884_v28 = vmul.f32 %v852_v0, %v1626_v6  ;;  %v868_v32 = vsel %vm804_vm7, %v1371_v42, %v836_v17  ;;  %v839_v33 = vmul.f32 %v1375_v23, %v1720_v36 }
 0x111   : > { %v1379_v34 = vpop.eup %1378  ;;  %v1247_v38 = vpack.c.bf16 %v902_v22, %v902_v22  ;;  %v900_v5 = vmul.f32 %v868_v32, %v1631_v10  ;;  %v855_v31 = vsel %vm791_vm8, %v1373_v16, %v823_v19  ;;  %v746_v44 = vadd.f32 1.0, %v1799_v58 }
 0x112   : > { %v1809_v45 = vpop.eup %1380  ;;  %1047 = vst.msk [vmem:[%s1793_s8 + $0x8] sm:$0xf] %vm1044_vm6, %v1231_v26  ;;  %v1229_v6 = vpack.c.bf16 %v884_v28, %v884_v28  ;;  %v887_v46 = vmul.f32 %v855_v31, %v1634_v11  ;;  %v871_v36 = vsel %vm807_vm9, %v1375_v23, %v839_v33  ;;  %v821_v55 = vmul.f32 %v1379_v34, %v1734_v53 }
 0x113   : > { %v1817_v10 = vpop.eup %1382  ;;  %1063 = vst.msk [vmem:[%s1793_s8 + $0x48] sm:$0xf] %vm1044_vm6, %v1247_v38  ;;  %v1245_v59 = vpack.c.bf16 %v900_v5, %v900_v5  ;;  %v903_v57 = vmul.f32 %v871_v36, %v1642_v20  ;;  %1396 = vrcp.f32 %v746_v44  ;;  %v728_v42 = vadd.f32 1.0, %v1809_v45 }
 0x114   : > { %v1385_v1 = vpop.eup %1384  ;;  %1045 = vst.msk [vmem:[%s1793_s8] sm:$0xf] %vm1044_vm6, %v1229_v6  ;;  %v1232_v11 = vpack.c.bf16 %v887_v46, %v887_v46  ;;  %v853_v8 = vsel %vm789_vm10, %v1379_v34, %v821_v55  ;;  %v744_v53 = vadd.f32 1.0, %v1817_v10  ;;  %1398 = vpow2.f32 %v680_v14 }
 0x115   : > { %v1828_v16 = vpop.eup %1386  ;;  %1061 = vst.msk [vmem:[%s1793_s8 + $0x40] sm:$0xf] %vm1044_vm6, %v1245_v59  ;;  %v1248_v20 = vpack.c.bf16 %v903_v57, %v903_v57  ;;  %v885_v15 = vmul.f32 %v853_v8, %v1645_v25  ;;  %v837_v18 = vmul.f32 %v1385_v1, %v1758_v9  ;;  %1400 = vrcp.f32 %v728_v42 }
 0x116   : > { %v1389_v17 = vpop.eup %1388  ;;  %1048 = vst.msk [vmem:[%s1793_s8 + $0xc] sm:$0xf] %vm1044_vm6, %v1232_v11  ;;  %1402 = vrcp.f32 %v744_v53  ;;  %v731_v23 = vadd.f32 1.0, %v1828_v16  ;;  %v654_v14 = vsub.f32 0.0, %v622_v60  ;;  %v1847_v19 = vadd.f32 %v1612_v56, %v1771_v29 }
 0x117   : > { %v1838_v22 = vpop.eup %1390  ;;  %1064 = vst.msk [vmem:[%s1793_s8 + $0x4c] sm:$0xf] %vm1044_vm6, %v1248_v20  ;;  %v1230_v0 = vpack.c.bf16 %v885_v15, %v885_v15  ;;  %v869_v25 = vsel %vm805_vm11, %v1385_v1, %v837_v18  ;;  %v826_v9 = vmul.f32 %v1389_v17, %v1765_v27  ;;  %v549_v44 = vmul.f32 %v1607_v54, %v1678_v62 }
 0x118   : > { %v1849_v26 = vpop.eup %1392  ;;  %v901_v28 = vmul.f32 %v869_v25, %v1651_v39  ;;  %1404 = vrcp.f32 %v731_v23  ;;  %v747_v60 = vadd.f32 1.0, %v1838_v22  ;;  %v712_v33 = vmul.f32 1.442695, %v654_v14 }
 0x119   : > { %v1854_v32 = vpop.eup %1394  ;;  %1046 = vst.msk [vmem:[%s1793_s8 + $0x4] sm:$0xf] %vm1044_vm6, %v1230_v0  ;;  %v858_v27 = vsel %vm794_vm12, %v1389_v17, %v826_v9  ;;  %v729_v29 = vadd.f32 1.0, %v1849_v26  ;;  %v604_v39 = vand.u32 2147483647, %v1847_v19  ;;  %v536_v6 = vmul.f32 %v1683_v3, %v1607_v54 }
 0x11a   : > { %v1246_v34 = vpack.c.bf16 %v901_v28, %v901_v28  ;;  %v890_v38 = vmul.f32 %v858_v27, %v1662_v48  ;;  %1406 = vrcp.f32 %v747_v60  ;;  %v745_v5 = vadd.f32 1.0, %v1854_v32 }
 0x11b   : > { %1408 = vrcp.f32 %v729_v29  ;;  %v636_v31 = vsub.f32 0.0, %v604_v39  ;;  %v552_v48 = vmul.f32 %v1685_v4, %v1607_v54  ;;  %v534_v36 = vmul.f32 %v1607_v54, %v1689_v12 }
 0x11c   : > { %1062 = vst.msk [vmem:[%s1793_s8 + $0x44] sm:$0xf] %vm1044_vm6, %v1246_v34  ;;  %v1235_v46 = vpack.c.bf16 %v890_v38, %v890_v38  ;;  %1410 = vrcp.f32 %v745_v5  ;;  %v1877_v57 = vadd.f32 %v1612_v56, %v549_v44  ;;  %v1880_v62 = vadd.f32 %v1612_v56, %v536_v6 }
 0x11d   : > { %v1397_v55 = vpop.eup %1396  ;;  %1412 = vpow2.f32 %v712_v33  ;;  %v676_v59 = vmul.f32 1.442695, %v636_v31  ;;  %v1890_v4 = vadd.f32 %v1612_v56, %v552_v48  ;;  %v1901_v15 = vadd.f32 %v1612_v56, %v534_v36 }
 0x11e   : > { %v1882_v3 = vpop.eup %1398  ;;  %1051 = vst.msk [vmem:[%s1793_s8 + $0x18] sm:$0xf] %vm1044_vm6, %v1235_v46  ;;  %v842_v42 = vmul.f32 %v1397_v55, %v1799_v58  ;;  %v620_v11 = vand.u32 2147483647, %v1877_v57  ;;  %v607_v20 = vand.u32 2147483647, %v1880_v62  ;;  %v550_v9 = vmul.f32 %v1607_v54, %v1691_v13 }
 0x11f   : > { %v1401_v12 = vpop.eup %1400  ;;  %v734_v1 = vadd.f32 1.0, %v1882_v3  ;;  %1414 = vpow2.f32 %v676_v59  ;;  %v605_v31 = vand.u32 2147483647, %v1901_v15  ;;  %vm798_vm4 = vcmp.ge.f32.partialorder %v1754_v52, 0.0 }
 0x120   : > { %v1403_v8 = vpop.eup %1402  ;;  %v874_v53 = vsel %vm810_vm13, %v1397_v55, %v842_v42  ;;  %v824_v58 = vmul.f32 %v1401_v12, %v1809_v45  ;;  %v652_v23 = vsub.f32 0.0, %v620_v11  ;;  %v639_v25 = vsub.f32 0.0, %v607_v20 }
 0x121   : > { %v906_v18 = vmul.f32 %v874_v53, %v1665_v50  ;;  %v840_v17 = vmul.f32 %v1403_v8, %v1817_v10  ;;  %1416 = vrcp.f32 %v734_v1  ;;  %v623_v45 = vand.u32 2147483647, %v1890_v4 }
 0x122   : > { %v1405_v14 = vpop.eup %1404  ;;  %v856_v0 = vsel %vm792_vm14, %v1401_v12, %v824_v58  ;;  %v708_v33 = vmul.f32 1.442695, %v652_v23  ;;  %v682_v39 = vmul.f32 1.442695, %v639_v25  ;;  %v637_v1 = vsub.f32 0.0, %v605_v31 }
 0x123   : > { %v1251_v28 = vpack.c.bf16 %v906_v18, %v906_v18  ;;  %v888_v60 = vmul.f32 %v856_v0, %v1668_v51  ;;  %v872_v50 = vsel %vm808_vm15, %v1403_v8, %v840_v17  ;;  %v827_v10 = vmul.f32 %v1405_v14, %v1828_v16 }
 0x124   : > { %v1407_v27 = vpop.eup %1406  ;;  %v904_v29 = vmul.f32 %v872_v50, %v1681_v2  ;;  %v655_v34 = vsub.f32 0.0, %v623_v45  ;;  %1418 = vpow2.f32 %v708_v33  ;;  %v678_v20 = vmul.f32 1.442695, %v637_v1 }
 0x125   : > { %v1409_v38 = vpop.eup %1408  ;;  %1067 = vst.msk [vmem:[%s1793_s8 + $0x58] sm:$0xf] %vm1044_vm6, %v1251_v28  ;;  %v1233_v13 = vpack.c.bf16 %v888_v60, %v888_v60  ;;  %v859_v51 = vsel %vm795_vm0, %v1405_v14, %v827_v10  ;;  %v843_v5 = vmul.f32 %v1407_v27, %v1838_v22  ;;  %1420 = vpow2.f32 %v682_v39 }
 0x126   : > { %v1411_v16 = vpop.eup %1410  ;;  %v1249_v44 = vpack.c.bf16 %v904_v29, %v904_v29  ;;  %v891_v2 = vmul.f32 %v859_v51, %v1700_v21  ;;  %v825_v6 = vmul.f32 %v1409_v38, %v1849_v26  ;;  %v714_v22 = vmul.f32 1.442695, %v655_v34 }
 0x127   : > { %v1923_v46 = vpop.eup %1412  ;;  %1049 = vst.msk [vmem:[%s1793_s8 + $0x10] sm:$0xf] %vm1044_vm6, %v1233_v13  ;;  %v875_v48 = vsel %vm811_vm1, %v1407_v27, %v843_v5  ;;  %v841_v36 = vmul.f32 %v1411_v16, %v1854_v32  ;;  %v539_v23 = vmul.f32 %v1712_v30, %v1607_v54  ;;  %v555_v14 = vmul.f32 %v1718_v35, %v1607_v54 }
 0x128   : > { %1065 = vst.msk [vmem:[%s1793_s8 + $0x50] sm:$0xf] %vm1044_vm6, %v1249_v44  ;;  %v1236_v55 = vpack.c.bf16 %v891_v2, %v891_v2  ;;  %v907_v21 = vmul.f32 %v875_v48, %v1706_v24  ;;  %v857_v26 = vsel %vm793_vm2, %v1409_v38, %v825_v6  ;;  %v750_v59 = vadd.f32 1.0, %v1923_v46 }
 0x129   : > { %v1936_v42 = vpop.eup %1414  ;;  %v889_v12 = vmul.f32 %v857_v26, %v1747_v7  ;;  %v873_v32 = vsel %vm809_vm3, %v1411_v16, %v841_v36  ;;  %1422 = vpow2.f32 %v714_v22  ;;  %v1946_v7 = vadd.f32 %v1612_v56, %v550_v9 }
 0x12a   : > { %1052 = vst.msk [vmem:[%s1793_s8 + $0x1c] sm:$0xf] %vm1044_vm6, %v1236_v55  ;;  %v1252_v11 = vpack.c.bf16 %v907_v21, %v907_v21  ;;  %v905_v24 = vmul.f32 %v873_v32, %v1751_v43  ;;  %1424 = vrcp.f32 %v750_v59  ;;  %v732_v8 = vadd.f32 1.0, %v1936_v42 }
 0x12b   : > { %v1417_v53 = vpop.eup %1416  ;;  %v1234_v58 = vpack.c.bf16 %v889_v12, %v889_v12  ;;  %v621_v43 = vand.u32 2147483647, %v1946_v7  ;;  %v1962_v25 = vadd.f32 %v1612_v56, %v539_v23  ;;  %v553_v30 = vmul.f32 %v1607_v54, %v1725_v41 }
 0x12c   : > { %1068 = vst.msk [vmem:[%s1793_s8 + $0x5c] sm:$0xf] %vm1044_vm6, %v1252_v11  ;;  %v1250_v18 = vpack.c.bf16 %v905_v24, %v905_v24  ;;  %v830_v17 = vmul.f32 %v1417_v53, %v1882_v3  ;;  %1426 = vrcp.f32 %v732_v8  ;;  %v537_v3 = vmul.f32 %v1607_v54, %v1723_v40 }
 0x12d   : > { %1050 = vst.msk [vmem:[%s1793_s8 + $0x14] sm:$0xf] %vm1044_vm6, %v1234_v58  ;;  %1428 = vpow2.f32 %v678_v20  ;;  %v653_v9 = vsub.f32 0.0, %v621_v43  ;;  %v1970_v28 = vadd.f32 %v1612_v56, %v555_v14  ;;  %v610_v60 = vand.u32 2147483647, %v1962_v25 }
 0x12e   : > { %1066 = vst.msk [vmem:[%s1793_s8 + $0x54] sm:$0xf] %vm1044_vm6, %v1250_v18  ;;  %v862_v0 = vsel %vm798_vm4, %v1417_v53, %v830_v17  ;;  %v1972_v35 = vpop.eup %1418  ;;  %v1976_v50 = vadd.f32 %v1612_v56, %v537_v3  ;;  %v1979_v10 = vadd.f32 %v1612_v56, %v553_v30  ;;  %v540_v38 = vmul.f32 %v1730_v47, %v1607_v54 }
 0x12f   : > { %v894_v45 = vmul.f32 %v862_v0, %v1754_v52  ;;  %v1981_v40 = vpop.eup %1420  ;;  %v748_v52 = vadd.f32 1.0, %v1972_v35  ;;  %v710_v27 = vmul.f32 1.442695, %v653_v9  ;;  %v626_v29 = vand.u32 2147483647, %v1970_v28 }
 0x130   : > { %v735_v33 = vadd.f32 1.0, %v1981_v40  ;;  %v642_v39 = vsub.f32 0.0, %v610_v60  ;;  %v608_v34 = vand.u32 2147483647, %v1976_v50  ;;  %vm814_vm5 = vcmp.ge.f32.partialorder %v1775_v37, 0.0 }
 0x131   : > { %v1239_v41 = vpack.c.bf16 %v894_v45, %v894_v45  ;;  %1430 = vrcp.f32 %v748_v52  ;;  %v658_v51 = vsub.f32 0.0, %v626_v29  ;;  %v624_v5 = vand.u32 2147483647, %v1979_v10 }
 0x132   : > { %1432 = vrcp.f32 %v735_v33  ;;  %v688_v44 = vmul.f32 1.442695, %v642_v39  ;;  %v640_v2 = vsub.f32 0.0, %v608_v34  ;;  %vm796_vm7 = vcmp.ge.f32.partialorder %v1847_v19, 0.0 }
 0x133   : > { %v1989_v13 = vpop.eup %1422  ;;  %1055 = vst.msk [vmem:[%s1793_s8 + $0x28] sm:$0xf] %vm1044_vm6, %v1239_v41  ;;  %1434 = vpow2.f32 %v710_v27  ;;  %v720_v47 = vmul.f32 1.442695, %v658_v51  ;;  %v656_v48 = vsub.f32 0.0, %v624_v5  ;;  %v1999_v55 = vadd.f32 %v1612_v56, %v540_v38 }
 0x134   : > { %v1425_v31 = vpop.eup %1424  ;;  %v751_v16 = vadd.f32 1.0, %v1989_v13  ;;  %v684_v22 = vmul.f32 1.442695, %v640_v2  ;;  %v556_v24 = vmul.f32 %v1732_v49, %v1607_v54  ;;  %v554_v20 = vmul.f32 %v1607_v54, %v1742_v63 }
 0x135   : > { %v846_v6 = vmul.f32 %v1425_v31, %v1923_v46  ;;  %v716_v46 = vmul.f32 1.442695, %v656_v48  ;;  %v611_v1 = vand.u32 2147483647, %v1999_v55  ;;  %vm812_vm8 = vcmp.ge.f32.partialorder %v1877_v57, 0.0 }
 0x136   : > { %v1427_v36 = vpop.eup %1426  ;;  %1436 = vrcp.f32 %v751_v16  ;;  %v2013_v58 = vadd.f32 %v1612_v56, %v556_v24  ;;  %v2026_v43 = vadd.f32 %v1612_v56, %v554_v20  ;;  %vm799_vm9 = vcmp.ge.f32.partialorder %v1880_v62, 0.0 }
 0x137   : > { %v2001_v21 = vpop.eup %1428  ;;  %v878_v26 = vsel %vm814_vm5, %v1425_v31, %v846_v6  ;;  %v828_v59 = vmul.f32 %v1427_v36, %v1936_v42  ;;  %1438 = vpow2.f32 %v688_v44  ;;  %v643_v42 = vsub.f32 0.0, %v611_v1 }
 0x138   : > { %v910_v12 = vmul.f32 %v878_v26, %v1775_v37  ;;  %v733_v32 = vadd.f32 1.0, %v2001_v21  ;;  %1440 = vpow2.f32 %v720_v47  ;;  %v538_v37 = vmul.f32 %v1607_v54, %v1740_v61 }
 0x139   : > { %v860_v11 = vsel %vm796_vm7, %v1427_v36, %v828_v59  ;;  %1442 = vpow2.f32 %v684_v22  ;;  %v690_v49 = vmul.f32 1.442695, %v643_v42  ;;  %v627_v23 = vand.u32 2147483647, %v2013_v58 }
 0x13a   : > { %v1255_v8 = vpack.c.bf16 %v910_v12, %v910_v12  ;;  %v892_v53 = vmul.f32 %v860_v11, %v1847_v19  ;;  %1444 = vrcp.f32 %v733_v32  ;;  %v2023_v19 = vadd.f32 %v1612_v56, %v538_v37 }
 0x13b   : > { %1446 = vpow2.f32 %v716_v46  ;;  %v1431_v17 = vpop.eup %1430  ;;  %v659_v0 = vsub.f32 0.0, %v627_v23  ;;  %vm815_vm10 = vcmp.ge.f32.partialorder %v1890_v4, 0.0  ;;  %v625_v9 = vand.u32 2147483647, %v2026_v43 }
 0x13c   : > { %1071 = vst.msk [vmem:[%s1793_s8 + $0x68] sm:$0xf] %vm1044_vm6, %v1255_v8  ;;  %v1237_v18 = vpack.c.bf16 %v892_v53, %v892_v53  ;;  %v1433_v14 = vpop.eup %1432  ;;  %v844_v54 = vmul.f32 %v1431_v17, %v1972_v35  ;;  %1448 = vpow2.f32 %v690_v49  ;;  %v609_v3 = vand.u32 2147483647, %v2023_v19 }
 0x13d   : > { %v1435_v61 = vpop.eup %1434  ;;  %v831_v63 = vmul.f32 %v1433_v14, %v1981_v40  ;;  %v722_v27 = vmul.f32 1.442695, %v659_v0  ;;  %v657_v6 = vsub.f32 0.0, %v625_v9  ;;  %vm797_vm11 = vcmp.ge.f32.partialorder %v1901_v15, 0.0 }
 0x13e   : > { %1053 = vst.msk [vmem:[%s1793_s8 + $0x20] sm:$0xf] %vm1044_vm6, %v1237_v18  ;;  %v876_v45 = vsel %vm812_vm8, %v1431_v17, %v844_v54  ;;  %v749_v56 = vadd.f32 1.0, %v1435_v61  ;;  %v641_v39 = vsub.f32 0.0, %v609_v3  ;;  %vm813_vm12 = vcmp.ge.f32.partialorder %v1946_v7, 0.0 }
 0x13f   : > { %v908_v41 = vmul.f32 %v876_v45, %v1877_v57  ;;  %v863_v35 = vsel %vm799_vm9, %v1433_v14, %v831_v63  ;;  %v718_v36 = vmul.f32 1.442695, %v657_v6  ;;  %vm802_vm13 = vcmp.ge.f32.partialorder %v1962_v25, 0.0 }
 0x140   : > { %v1437_v30 = vpop.eup %1436  ;;  %v895_v40 = vmul.f32 %v863_v35, %v1880_v62  ;;  %1450 = vrcp.f32 %v749_v56  ;;  %v686_v2 = vmul.f32 1.442695, %v641_v39  ;;  %vm818_vm14 = vcmp.ge.f32.partialorder %v1970_v28, 0.0 }
 0x141   : > { %v1439_v60 = vpop.eup %1438  ;;  %v847_v52 = vmul.f32 %v1437_v30, %v1989_v13  ;;  %v1253_v38 = vpack.c.bf16 %v908_v41, %v908_v41  ;;  %1452 = vpow2.f32 %v722_v27  ;;  %vm800_vm15 = vcmp.ge.f32.partialorder %v1976_v50, 0.0 }
 0x142   : > { %v1441_v29 = vpop.eup %1440  ;;  %v738_v33 = vadd.f32 1.0, %v1439_v60  ;;  %v1240_v16 = vpack.c.bf16 %v895_v40, %v895_v40  ;;  %vm816_vm0 = vcmp.ge.f32.partialorder %v1979_v10, 0.0  ;;  %vm803_vm1 = vcmp.ge.f32.partialorder %v1999_v55, 0.0 }
 0x143   : > { %v1443_v34 = vpop.eup %1442  ;;  %v879_v51 = vsel %vm815_vm10, %v1437_v30, %v847_v52  ;;  %v754_v5 = vadd.f32 1.0, %v1441_v29  ;;  %1069 = vst.msk [vmem:[%s1793_s8 + $0x60] sm:$0xf] %vm1044_vm6, %v1253_v38  ;;  %vm819_vm2 = vcmp.ge.f32.partialorder %v2013_v58, 0.0  ;;  %vm801_vm3 = vcmp.ge.f32.partialorder %v2023_v19, 0.0 }
 0x144   : > { %v1445_v31 = vpop.eup %1444  ;;  %v911_v57 = vmul.f32 %v879_v51, %v1890_v4  ;;  %1454 = vrcp.f32 %v738_v33  ;;  %v736_v13 = vadd.f32 1.0, %v1443_v34  ;;  %1056 = vst.msk [vmem:[%s1793_s8 + $0x2c] sm:$0xf] %vm1044_vm6, %v1240_v16  ;;  %vm817_vm4 = vcmp.ge.f32.partialorder %v2026_v43, 0.0 }
 0x145   : > { %v1447_v44 = vpop.eup %1446  ;;  %v829_v62 = vmul.f32 %v1445_v31, %v2001_v21  ;;  %1456 = vrcp.f32 %v754_v5 }
 0x146   : > { %v1256_v47 = vpack.c.bf16 %v911_v57, %v911_v57  ;;  %1458 = vrcp.f32 %v736_v13  ;;  %v752_v48 = vadd.f32 1.0, %v1447_v44  ;;  %v1449_v22 = vpop.eup %1448 }
 0x147   : > { %v861_v4 = vsel %vm797_vm11, %v1445_v31, %v829_v62  ;;  %1460 = vpow2.f32 %v686_v2  ;;  %v739_v21 = vadd.f32 1.0, %v1449_v22 }
 0x148   : > { %1072 = vst.msk [vmem:[%s1793_s8 + $0x6c] sm:$0xf] %vm1044_vm6, %v1256_v47  ;;  %v893_v26 = vmul.f32 %v861_v4, %v1901_v15  ;;  %1462 = vrcp.f32 %v752_v48 }
 0x149   : > { %1464 = vpow2.f32 %v718_v36 }
 0x14a   : > { %v1238_v59 = vpack.c.bf16 %v893_v26, %v893_v26  ;;  %1466 = vrcp.f32 %v739_v21  ;;  %v1451_v46 = vpop.eup %1450 }
 0x14b   : > { %v1453_v12 = vpop.eup %1452  ;;  %v845_v32 = vmul.f32 %v1451_v46, %v1435_v61 }
 0x14c   : > { %1054 = vst.msk [vmem:[%s1793_s8 + $0x24] sm:$0xf] %vm1044_vm6, %v1238_v59  ;;  %v755_v11 = vadd.f32 1.0, %v1453_v12 }
 0x14d   : > { %v877_v8 = vsel %vm813_vm12, %v1451_v46, %v845_v32 }
 0x14e   : > { %v1455_v1 = vpop.eup %1454  ;;  %v909_v15 = vmul.f32 %v877_v8, %v1946_v7  ;;  %1468 = vrcp.f32 %v755_v11 }
 0x14f   : > { %v1457_v24 = vpop.eup %1456  ;;  %v834_v53 = vmul.f32 %v1455_v1, %v1439_v60 }
 0x150   : > { %v1459_v42 = vpop.eup %1458  ;;  %v850_v37 = vmul.f32 %v1457_v24, %v1441_v29  ;;  %v1254_v23 = vpack.c.bf16 %v909_v15, %v909_v15 }
 0x151   : > { %v1461_v20 = vpop.eup %1460  ;;  %v866_v18 = vsel %vm802_vm13, %v1455_v1, %v834_v53  ;;  %v832_v49 = vmul.f32 %v1459_v42, %v1443_v34 }
 0x152   : > { %v1463_v17 = vpop.eup %1462  ;;  %v898_v14 = vmul.f32 %v866_v18, %v1962_v25  ;;  %v882_v54 = vsel %vm818_vm14, %v1457_v24, %v850_v37  ;;  %v737_v61 = vadd.f32 1.0, %v1461_v20  ;;  %1070 = vst.msk [vmem:[%s1793_s8 + $0x64] sm:$0xf] %vm1044_vm6, %v1254_v23 }
 0x153   : > { %v1465_v7 = vpop.eup %1464  ;;  %v914_v63 = vmul.f32 %v882_v54, %v1970_v28  ;;  %v864_v0 = vsel %vm800_vm15, %v1459_v42, %v832_v49  ;;  %v848_v3 = vmul.f32 %v1463_v17, %v1447_v44 }
 0x154   : > { %v1243_v30 = vpack.c.bf16 %v898_v14, %v898_v14  ;;  %v896_v45 = vmul.f32 %v864_v0, %v1976_v50  ;;  %1470 = vrcp.f32 %v737_v61  ;;  %v753_v56 = vadd.f32 1.0, %v1465_v7  ;;  %v1467_v25 = vpop.eup %1466 }
 0x155   : > { %v1259_v9 = vpack.c.bf16 %v914_v63, %v914_v63  ;;  %v880_v60 = vsel %vm816_vm0, %v1463_v17, %v848_v3  ;;  %v835_v35 = vmul.f32 %v1467_v25, %v1449_v22 }
 0x156   : > { %1059 = vst.msk [vmem:[%s1793_s8 + $0x38] sm:$0xf] %vm1044_vm6, %v1243_v30  ;;  %v1241_v28 = vpack.c.bf16 %v896_v45, %v896_v45  ;;  %v912_v41 = vmul.f32 %v880_v60, %v1979_v10  ;;  %1472 = vrcp.f32 %v753_v56 }
 0x157   : > { %1075 = vst.msk [vmem:[%s1793_s8 + $0x78] sm:$0xf] %vm1044_vm6, %v1259_v9  ;;  %v867_v52 = vsel %vm803_vm1, %v1467_v25, %v835_v35 }
 0x158   : > { %1057 = vst.msk [vmem:[%s1793_s8 + $0x30] sm:$0xf] %vm1044_vm6, %v1241_v28  ;;  %v1257_v50 = vpack.c.bf16 %v912_v41, %v912_v41  ;;  %v899_v27 = vmul.f32 %v867_v52, %v1999_v55  ;;  %v1469_v29 = vpop.eup %1468 }
 0x159   : > { %v851_v33 = vmul.f32 %v1469_v29, %v1453_v12 }
 0x15a   : > { %1073 = vst.msk [vmem:[%s1793_s8 + $0x70] sm:$0xf] %vm1044_vm6, %v1257_v50  ;;  %v1244_v40 = vpack.c.bf16 %v899_v27, %v899_v27 }
 0x15b   : > { %v883_v10 = vsel %vm819_vm2, %v1469_v29, %v851_v33 }
 0x15c   : > { %1060 = vst.msk [vmem:[%s1793_s8 + $0x3c] sm:$0xf] %vm1044_vm6, %v1244_v40  ;;  %v915_v34 = vmul.f32 %v883_v10, %v2013_v58 }
 0x15e   : > { %v1471_v39 = vpop.eup %1470  ;;  %v1260_v5 = vpack.c.bf16 %v915_v34, %v915_v34 }
 0x15f   : > { %v833_v38 = vmul.f32 %v1471_v39, %v1461_v20 }
 0x160   : > { %v1473_v51 = vpop.eup %1472  ;;  %1076 = vst.msk [vmem:[%s1793_s8 + $0x7c] sm:$0xf] %vm1044_vm6, %v1260_v5 }
 0x161   : > { %v865_v55 = vsel %vm801_vm3, %v1471_v39, %v833_v38  ;;  %v849_v31 = vmul.f32 %v1473_v51, %v1465_v7 }
 0x162   : > { %v897_v16 = vmul.f32 %v865_v55, %v2023_v19 }
 0x163   : > { %v881_v57 = vsel %vm817_vm4, %v1473_v51, %v849_v31 }
 0x164   : > { %v1242_v13 = vpack.c.bf16 %v897_v16, %v897_v16  ;;  %v913_v44 = vmul.f32 %v881_v57, %v2026_v43 }
 0x166   : > { %1058 = vst.msk [vmem:[%s1793_s8 + $0x34] sm:$0xf] %vm1044_vm6, %v1242_v13  ;;  %v1258_v58 = vpack.c.bf16 %v913_v44, %v913_v44 }
 0x168   : > { %1074 = vst.msk [vmem:[%s1793_s8 + $0x74] sm:$0xf] %vm1044_vm6, %v1258_v58 }
 0x169 PF: > { %s14_s17 = sadd.s32 1, %s1496_s17   ;;  %s2102_s15 = smov %s1492_s16 }
 0x16a   : > { %p11_p5 = scmp.ge.s32.totalorder %s14_s17, 4   ;;  %s2103_s16 = smov %s2105_s18 }
 0x16c   :  { %13 = sbr.rel (!%p11_p5) target bundleno = 2 (0x2), region = 66 }

</bundles_post_ra>
